<compile_context>
chip_gen: v7x
topology: tpu7x:2x2x1
jax: 0.10.0
libtpu: 0.0.40
codegen_flags: <defaults>
</compile_context>

<pallas_src>
import functools

import jax
import jax.numpy as jnp
from jax.experimental import pallas as pl
from jax.experimental.pallas import tpu as pltpu


def _round_up(a, m):
    return (a + m - 1) // m * m


def _vmem_estimate(TL, halo, Cin_p, Cout_p, K, pad):
    """Rough per-step VMEM working set (bytes): double-buffered grid blocks +
    double-buffered weights + in-register/temporary im2col & accumulators."""
    bf, f4 = 2, 4
    L1 = TL + pad
    blocks = 2 * (halo * Cin_p * bf + TL * Cin_p * bf + TL * Cout_p * bf)
    weights = 2 * ((K * Cin_p * Cout_p + K * Cout_p * Cout_p
                    + Cin_p * Cout_p) * bf + 3 * Cout_p * f4)
    temps = ((TL + halo) * Cin_p * bf          # xb (halo ++ body)
             + L1 * K * Cin_p * bf             # x_im
             + L1 * Cout_p * (f4 + bf)         # h1 f32 + bf16
             + TL * K * Cout_p * bf            # h_im
             + 3 * TL * Cout_p * f4)           # h2 / res / sum
    return blocks + weights + temps


def _temporal_block_kernel(halo_ref, x_ref, w1_ref, b1_ref, w2_ref, b2_ref,
                           wr_ref, br_ref, o_ref, *, K, dilation, pad, halo,
                           TL, use_downsample):
    """One (batch, time-tile) grid step.

    halo_ref: (1, 1, halo, Cin_p)   bf16  left-halo rows (times t0-halo..t0-1)
    x_ref   : (1, TL, Cin_p)        bf16  current tile   (times t0..t0+TL-1)
    w1_ref  : (K*Cin_p, Cout_p)     bf16  conv1 weights, im2col layout
    b1_ref  : (1, Cout_p)           f32
    w2_ref  : (K*Cout_p, Cout_p)    bf16  conv2 weights, im2col layout
    b2_ref  : (1, Cout_p)           f32
    wr_ref  : (Cin_p, Cout_p)       bf16  residual 1x1 weights (unused if identity)
    br_ref  : (1, Cout_p)           f32   residual bias        (unused if identity)
    o_ref   : (1, TL, Cout_p)       bf16
    """
    f32 = jnp.float32
    L1 = TL + pad                   # rows of h1 needed (tile + causal look-back)
    base = halo - 2 * pad           # >= 0 (halo = 2*pad rounded up to 16)

    # contiguous (halo + TL, Cin_p) window of x in VMEM/registers
    xb = jnp.concatenate([halo_ref[0, 0], x_ref[0]], axis=0)

    # ---- conv1: one deep matmul over the K dilated taps (im2col) ----------
    x_im = jnp.concatenate(
        [xb[base + j * dilation: base + j * dilation + L1, :] for j in range(K)],
        axis=-1)                                               # (L1, K*Cin_p)
    h1 = jnp.dot(x_im, w1_ref[...], preferred_element_type=f32) + b1_ref[...]
    h1 = jnp.maximum(h1, 0.0)

    # PyTorch zero-pads h1 before conv2 (it does NOT see relu(conv1(zeros))),
    # so h1 rows whose original time < 0 must be zeroed.  Only tiles that
    # actually touch t < 0 pay for the iota/compare/select.
    t0 = pl.program_id(1) * TL

    def _mask(v):
        row_t = jax.lax.broadcasted_iota(jnp.int32, v.shape, 0) + (t0 - pad)
        return jnp.where(row_t >= 0, v, 0.0)

    h1 = jax.lax.cond(t0 < pad, _mask, lambda v: v, h1)
    h1 = h1.astype(jnp.bfloat16)

    # ---- conv2 (im2col) + inner ReLU ---------------------------------------
    h_im = jnp.concatenate(
        [h1[j * dilation: j * dilation + TL, :] for j in range(K)],
        axis=-1)                                               # (TL, K*Cout_p)
    h2 = jnp.dot(h_im, w2_ref[...], preferred_element_type=f32) + b2_ref[...]
    h2 = jnp.maximum(h2, 0.0)        # relu2 — must precede the residual add

    # ---- residual branch + outer ReLU --------------------------------------
    x_cur = x_ref[0]                                           # (TL, Cin_p)
    if use_downsample:
        res = jnp.dot(x_cur, wr_ref[...], preferred_element_type=f32) + br_ref[...]
    else:
        res = x_cur.astype(f32)

    o_ref[0, :, :] = jnp.maximum(h2 + res, 0.0).astype(o_ref.dtype)


def temporal_block_time_major(x_tm, w1, b1, w2, b2, wd, bd, *, kernel_size,
                              dilation, padding, time_tile=512,
                              vmem_budget_bytes=40 * 2**20):
    """Time-major core.  x_tm: (B, L, C_in).  Returns (B, L, C_out) bfloat16.

    Stacked TemporalBlocks should chain this function directly so the
    NCW <-> time-major layout glue is paid once per network, not per block.
    """
    B, L, Cin = x_tm.shape
    Cout = w1.shape[0]
    K = kernel_size
    pad = padding

    Cin_p = _round_up(Cin, 128)                    # lane-dense channels
    Cout_p = _round_up(Cout, 128)
    halo = max(16, _round_up(2 * pad, 16))         # bf16 sublane-aligned halo

    # time tile: 16-aligned, shrunk until the working set fits the VMEM budget
    TL = min(_round_up(L, 16), _round_up(time_tile, 16))
    while TL > 64 and _vmem_estimate(TL, halo, Cin_p, Cout_p, K, pad) > vmem_budget_bytes:
        TL = max(64, _round_up(TL // 2, 16))
    NT = -(-L // TL)
    Lt = NT * TL

    # ---- body array: (B, Lt, Cin_p) bf16, no pre-tiling, no halo copy ------
    x_bf = x_tm.astype(jnp.bfloat16)
    x_body = jnp.pad(x_bf, ((0, 0), (0, Lt - L), (0, Cin_p - Cin)))

    # ---- tiny per-tile halo array: (B, NT, halo, Cin_p) --------------------
    halos = [jnp.zeros((B, halo, Cin_p), jnp.bfloat16)]
    for l in range(1, NT):
        start = l * TL - halo
        if start >= 0:
            halos.append(x_body[:, start:start + halo, :])
        else:  # halo longer than the available prefix: left-pad with zeros
            halos.append(jnp.pad(x_body[:, :l * TL, :],
                                 ((0, 0), (halo - l * TL, 0), (0, 0))))
    x_halo = jnp.stack(halos, axis=1)

    # ---- weights: im2col layout, channel-padded, bf16 ----------------------
    w1_t = jnp.transpose(w1, (2, 1, 0))                        # (K, Cin, Cout)
    w1_p = jnp.pad(w1_t, ((0, 0), (0, Cin_p - Cin), (0, Cout_p - Cout)))
    w1_p = w1_p.reshape(K * Cin_p, Cout_p).astype(jnp.bfloat16)
    b1_p = jnp.pad(b1, (0, Cout_p - Cout)).reshape(1, Cout_p).astype(jnp.float32)

    w2_t = jnp.transpose(w2, (2, 1, 0))                        # (K, Cout, Cout)
    w2_p = jnp.pad(w2_t, ((0, 0), (0, Cout_p - Cout), (0, Cout_p - Cout)))
    w2_p = w2_p.reshape(K * Cout_p, Cout_p).astype(jnp.bfloat16)
    b2_p = jnp.pad(b2, (0, Cout_p - Cout)).reshape(1, Cout_p).astype(jnp.float32)

    use_downsample = wd is not None
    if use_downsample:
        wr_p = jnp.pad(wd[:, :, 0].T,
                       ((0, Cin_p - Cin), (0, Cout_p - Cout))).astype(jnp.bfloat16)
        br_p = jnp.pad(bd, (0, Cout_p - Cout)).reshape(1, Cout_p).astype(jnp.float32)
    else:
        assert Cin == Cout, "identity residual requires C_in == C_out"
        wr_p = jnp.zeros((Cin_p, Cout_p), jnp.bfloat16)        # unused in kernel
        br_p = jnp.zeros((1, Cout_p), jnp.float32)             # unused in kernel

    kernel = functools.partial(_temporal_block_kernel, K=K, dilation=dilation,
                               pad=pad, halo=halo, TL=TL,
                               use_downsample=use_downsample)

    est = _vmem_estimate(TL, halo, Cin_p, Cout_p, K, pad)
    vmem_limit = int(min(max(1.3 * est, 32 * 2**20), 96 * 2**20))

    out = pl.pallas_call(
        kernel,
        out_shape=jax.ShapeDtypeStruct((B, Lt, Cout_p), jnp.bfloat16),
        grid_spec=pltpu.PrefetchScalarGridSpec(
            num_scalar_prefetch=0,
            grid=(B, NT),
            in_specs=[
                pl.BlockSpec((1, 1, halo, Cin_p), lambda b, l: (b, l, 0, 0)),
                pl.BlockSpec((1, TL, Cin_p), lambda b, l: (b, l, 0)),
                pl.BlockSpec((K * Cin_p, Cout_p), lambda b, l: (0, 0)),
                pl.BlockSpec((1, Cout_p), lambda b, l: (0, 0)),
                pl.BlockSpec((K * Cout_p, Cout_p), lambda b, l: (0, 0)),
                pl.BlockSpec((1, Cout_p), lambda b, l: (0, 0)),
                pl.BlockSpec((Cin_p, Cout_p), lambda b, l: (0, 0)),
                pl.BlockSpec((1, Cout_p), lambda b, l: (0, 0)),
            ],
            out_specs=pl.BlockSpec((1, TL, Cout_p), lambda b, l: (b, l, 0)),
        ),
        compiler_params=pltpu.CompilerParams(
            dimension_semantics=("parallel", "parallel"),
            vmem_limit_bytes=vmem_limit),
    )(x_halo, x_body, w1_p, b1_p, w2_p, b2_p, wr_p, br_p)

    return out[:, :L, :Cout]


def temporal_block(x, w1, b1, w2, b2, wd, bd, *, kernel_size, dilation,
                   padding, time_tile=512):
    """Convenience NCW wrapper.  x: (B, C_in, L).  Returns (B, C_out, L) f32."""
    x_tm = jnp.transpose(x, (0, 2, 1))
    out_tm = temporal_block_time_major(
        x_tm, w1, b1, w2, b2, wd, bd, kernel_size=kernel_size,
        dilation=dilation, padding=padding, time_tile=time_tile)
    return jnp.transpose(out_tm, (0, 2, 1)).astype(jnp.float32)


def _reference(x, w1, b1, w2, b2, wd, bd, kernel_size, dilation, padding):
    """Plain-JAX f32 reference mirroring the PyTorch module (eval mode)."""
    def causal_conv(x_, w_, b_):
        B, Ci, L = x_.shape
        xp = jnp.pad(x_, ((0, 0), (0, 0), (padding, 0)))
        out = jnp.zeros((B, w_.shape[0], L), jnp.float32)
        for j in range(kernel_size):
            out = out + jnp.einsum('oc,bcl->bol', w_[:, :, j],
                                   xp[:, :, j * dilation:j * dilation + L])
        return out + b_[None, :, None]

    h1 = jax.nn.relu(causal_conv(x, w1, b1))
    h2 = jax.nn.relu(causal_conv(h1, w2, b2))
    if wd is None:
        res = x
    else:
        res = jnp.einsum('oc,bcl->bol', wd[:, :, 0], x) + bd[None, :, None]
    return jax.nn.relu(h2 + res)


def _run_case(key, B, Cin, Cout, L, kernel_size, dilation, *, downsample,
              time_tile):
    padding = (kernel_size - 1) * dilation
    k1, k2, k3, k4, k5, k6, kx = jax.random.split(key, 7)
    w1 = 0.01 * jax.random.normal(k1, (Cout, Cin, kernel_size), jnp.float32)
    b1 = 0.1 * jax.random.normal(k2, (Cout,), jnp.float32)
    w2 = 0.01 * jax.random.normal(k3, (Cout, Cout, kernel_size), jnp.float32)
    b2 = 0.1 * jax.random.normal(k4, (Cout,), jnp.float32)
    if downsample:
        wd = 0.01 * jax.random.normal(k5, (Cout, Cin, 1), jnp.float32)
        bd = 0.1 * jax.random.normal(k6, (Cout,), jnp.float32)
    else:
        wd, bd = None, None
    x = jax.random.normal(kx, (B, Cin, L), jnp.float32)

    out = temporal_block(x, w1, b1, w2, b2, wd, bd,
                         kernel_size=kernel_size, dilation=dilation,
                         padding=padding, time_tile=time_tile)
    out = jax.block_until_ready(out)

    ref = _reference(x, w1, b1, w2, b2, wd, bd, kernel_size, dilation, padding)
    assert out.shape == (B, Cout, L)
    assert jnp.allclose(out, ref, atol=3e-2, rtol=3e-2), "mismatch vs reference"


if __name__ == "__main__":
    key = jax.random.PRNGKey(0)
    k_a, k_b = jax.random.split(key)

    # case 1: module defaults from the spec (downsample path, dilation 2)
    _run_case(k_a, B=2, Cin=4, Cout=8, L=16, kernel_size=3, dilation=2,
              downsample=True, time_tile=512)

    # case 2: identity-residual path + multi-tile time grid (exercises halo)
    _run_case(k_b, B=2, Cin=8, Cout=8, L=80, kernel_size=3, dilation=1,
              downsample=False, time_tile=32)

    print("KERNEL_OK")
</pallas_src>

<mosaic_0001>
module attributes {stable_mosaic.version = 11 : i64} {
  func.func @_temporal_block_kernel(%arg0: i32, %arg1: i32, %arg2: memref<1x1x16x128xbf16, #tpu.memory_space<vmem>>, %arg3: memref<1x16x128xbf16, #tpu.memory_space<vmem>>, %arg4: memref<384x128xbf16, #tpu.memory_space<vmem>>, %arg5: memref<1x128xf32, #tpu.memory_space<vmem>>, %arg6: memref<384x128xbf16, #tpu.memory_space<vmem>>, %arg7: memref<1x128xf32, #tpu.memory_space<vmem>>, %arg8: memref<128x128xbf16, #tpu.memory_space<vmem>>, %arg9: memref<1x128xf32, #tpu.memory_space<vmem>>, %arg10: memref<1x16x128xbf16, #tpu.memory_space<vmem>>) attributes {dimension_semantics = [#tpu.dimension_semantics<parallel>, #tpu.dimension_semantics<parallel>], iteration_bounds = array<i64: 2, 1>, scalar_prefetch = 0 : i64, scratch_operands = 0 : i64, tpu.core_type = #tpu.core_type<tc>, window_params = [{transform_indices = @transform_0, window_bounds = array<i64: 1, 1, 16, 128>}, {transform_indices = @transform_1, window_bounds = array<i64: 1, 16, 128>}, {pipeline_mode = #tpu.pipeline_mode<synchronous>, transform_indices = @transform_2, window_bounds = array<i64: 384, 128>}, {pipeline_mode = #tpu.pipeline_mode<synchronous>, transform_indices = @transform_3, window_bounds = array<i64: 1, 128>}, {pipeline_mode = #tpu.pipeline_mode<synchronous>, transform_indices = @transform_4, window_bounds = array<i64: 384, 128>}, {pipeline_mode = #tpu.pipeline_mode<synchronous>, transform_indices = @transform_5, window_bounds = array<i64: 1, 128>}, {pipeline_mode = #tpu.pipeline_mode<synchronous>, transform_indices = @transform_6, window_bounds = array<i64: 128, 128>}, {pipeline_mode = #tpu.pipeline_mode<synchronous>, transform_indices = @transform_7, window_bounds = array<i64: 1, 128>}, {transform_indices = @transform_8, window_bounds = array<i64: 1, 16, 128>}]} {
    %c0 = arith.constant 0 : index
    %c0_0 = arith.constant 0 : index
    %c0_1 = arith.constant 0 : index
    %c0_2 = arith.constant 0 : index
    %0 = vector.load %arg2[%c0, %c0_0, %c0_1, %c0_2] : memref<1x1x16x128xbf16, #tpu.memory_space<vmem>>, vector<1x1x16x128xbf16>
    %1 = vector.shape_cast %0 : vector<1x1x16x128xbf16> to vector<16x128xbf16>
    %c0_3 = arith.constant 0 : index
    %c0_4 = arith.constant 0 : index
    %c0_5 = arith.constant 0 : index
    %2 = vector.load %arg3[%c0_3, %c0_4, %c0_5] : memref<1x16x128xbf16, #tpu.memory_space<vmem>>, vector<1x16x128xbf16>
    %3 = vector.shape_cast %2 : vector<1x16x128xbf16> to vector<16x128xbf16>
    %4 = tpu.concatenate %1, %3 in 0 : vector<16x128xbf16>, vector<16x128xbf16> -> vector<32x128xbf16>
    %5 = vector.extract_strided_slice %4 {offsets = [8, 0], sizes = [20, 128], strides = [1, 1]} : vector<32x128xbf16> to vector<20x128xbf16>
    %6 = vector.extract_strided_slice %4 {offsets = [10, 0], sizes = [20, 128], strides = [1, 1]} : vector<32x128xbf16> to vector<20x128xbf16>
    %7 = vector.extract_strided_slice %4 {offsets = [12, 0], sizes = [20, 128], strides = [1, 1]} : vector<32x128xbf16> to vector<20x128xbf16>
    %8 = tpu.concatenate %5, %6, %7 in 1 : vector<20x128xbf16>, vector<20x128xbf16>, vector<20x128xbf16> -> vector<20x384xbf16>
    %c0_6 = arith.constant 0 : index
    %c0_7 = arith.constant 0 : index
    %9 = vector.load %arg4[%c0_6, %c0_7] : memref<384x128xbf16, #tpu.memory_space<vmem>>, vector<384x128xbf16>
    %cst = arith.constant dense<0.000000e+00> : vector<20x128xf32>
    %10 = tpu.matmul %8, %9, %cst {dimension_numbers = #tpu.dot_dimension_numbers<[1], [0], [0], [1], [0, 0, 1, 1], [], []>} : vector<20x384xbf16>, vector<384x128xbf16>, vector<20x128xf32> -> vector<20x128xf32>
    %c0_8 = arith.constant 0 : index
    %c0_9 = arith.constant 0 : index
    %11 = vector.load %arg5[%c0_8, %c0_9] : memref<1x128xf32, #tpu.memory_space<vmem>>, vector<1x128xf32>
    %12 = vector.broadcast %11 : vector<1x128xf32> to vector<20x128xf32>
    %13 = arith.addf %10, %12 : vector<20x128xf32>
    %cst_10 = arith.constant 0.000000e+00 : f32
    %14 = vector.broadcast %cst_10 : f32 to vector<20x128xf32>
    %15 = arith.maximumf %13, %14 : vector<20x128xf32>
    %c16_i32 = arith.constant 16 : i32
    %16 = arith.muli %arg1, %c16_i32 : i32
    %c4_i32 = arith.constant 4 : i32
    %17 = arith.cmpi slt, %16, %c4_i32 : i32
    %18 = arith.extui %17 : i1 to i32
    %c0_i32 = arith.constant 0 : i32
    %19 = arith.cmpi ne, %18, %c0_i32 : i32
    %20 = scf.if %19 -> (vector<20x128xf32>) {
      %47 = tpu.iota {dimensions = array<i32: 0>} : vector<20x128xi32>
      %c4_i32_29 = arith.constant 4 : i32
      %48 = arith.subi %16, %c4_i32_29 : i32
      %49 = vector.broadcast %48 : i32 to vector<20x128xi32>
      %50 = arith.addi %47, %49 : vector<20x128xi32>
      %c0_i32_30 = arith.constant 0 : i32
      %51 = vector.broadcast %c0_i32_30 : i32 to vector<20x128xi32>
      %52 = arith.cmpi sge, %50, %51 : vector<20x128xi32>
      %cst_31 = arith.constant 0.000000e+00 : f32
      %53 = vector.broadcast %cst_31 : f32 to vector<20x128xf32>
      %54 = arith.select %52, %15, %53 : vector<20x128xi1>, vector<20x128xf32>
      scf.yield %54 : vector<20x128xf32>
    } else {
      scf.yield %15 : vector<20x128xf32>
    }
    %21 = arith.truncf %20 : vector<20x128xf32> to vector<20x128xbf16>
    %22 = vector.extract_strided_slice %21 {offsets = [0, 0], sizes = [16, 128], strides = [1, 1]} : vector<20x128xbf16> to vector<16x128xbf16>
    %23 = vector.extract_strided_slice %21 {offsets = [2, 0], sizes = [16, 128], strides = [1, 1]} : vector<20x128xbf16> to vector<16x128xbf16>
    %24 = vector.extract_strided_slice %21 {offsets = [4, 0], sizes = [16, 128], strides = [1, 1]} : vector<20x128xbf16> to vector<16x128xbf16>
    %25 = tpu.concatenate %22, %23, %24 in 1 : vector<16x128xbf16>, vector<16x128xbf16>, vector<16x128xbf16> -> vector<16x384xbf16>
    %c0_11 = arith.constant 0 : index
    %c0_12 = arith.constant 0 : index
    %26 = vector.load %arg6[%c0_11, %c0_12] : memref<384x128xbf16, #tpu.memory_space<vmem>>, vector<384x128xbf16>
    %cst_13 = arith.constant dense<0.000000e+00> : vector<16x128xf32>
    %27 = tpu.matmul %25, %26, %cst_13 {dimension_numbers = #tpu.dot_dimension_numbers<[1], [0], [0], [1], [0, 0, 1, 1], [], []>} : vector<16x384xbf16>, vector<384x128xbf16>, vector<16x128xf32> -> vector<16x128xf32>
    %c0_14 = arith.constant 0 : index
    %c0_15 = arith.constant 0 : index
    %28 = vector.load %arg7[%c0_14, %c0_15] : memref<1x128xf32, #tpu.memory_space<vmem>>, vector<1x128xf32>
    %29 = vector.broadcast %28 : vector<1x128xf32> to vector<16x128xf32>
    %30 = arith.addf %27, %29 : vector<16x128xf32>
    %cst_16 = arith.constant 0.000000e+00 : f32
    %31 = vector.broadcast %cst_16 : f32 to vector<16x128xf32>
    %32 = arith.maximumf %30, %31 : vector<16x128xf32>
    %c0_17 = arith.constant 0 : index
    %c0_18 = arith.constant 0 : index
    %c0_19 = arith.constant 0 : index
    %33 = vector.load %arg3[%c0_17, %c0_18, %c0_19] : memref<1x16x128xbf16, #tpu.memory_space<vmem>>, vector<1x16x128xbf16>
    %34 = vector.shape_cast %33 : vector<1x16x128xbf16> to vector<16x128xbf16>
    %c0_20 = arith.constant 0 : index
    %c0_21 = arith.constant 0 : index
    %35 = vector.load %arg8[%c0_20, %c0_21] : memref<128x128xbf16, #tpu.memory_space<vmem>>, vector<128x128xbf16>
    %cst_22 = arith.constant dense<0.000000e+00> : vector<16x128xf32>
    %36 = tpu.matmul %34, %35, %cst_22 {dimension_numbers = #tpu.dot_dimension_numbers<[1], [0], [0], [1], [0, 0, 1, 1], [], []>} : vector<16x128xbf16>, vector<128x128xbf16>, vector<16x128xf32> -> vector<16x128xf32>
    %c0_23 = arith.constant 0 : index
    %c0_24 = arith.constant 0 : index
    %37 = vector.load %arg9[%c0_23, %c0_24] : memref<1x128xf32, #tpu.memory_space<vmem>>, vector<1x128xf32>
    %38 = vector.broadcast %37 : vector<1x128xf32> to vector<16x128xf32>
    %39 = arith.addf %36, %38 : vector<16x128xf32>
    %40 = arith.addf %32, %39 : vector<16x128xf32>
    %cst_25 = arith.constant 0.000000e+00 : f32
    %41 = vector.broadcast %cst_25 : f32 to vector<16x128xf32>
    %42 = arith.maximumf %40, %41 : vector<16x128xf32>
    %43 = arith.truncf %42 : vector<16x128xf32> to vector<16x128xbf16>
    %c0_26 = arith.constant 0 : index
    %c0_27 = arith.constant 0 : index
    %c0_28 = arith.constant 0 : index
    %44 = vector.load %arg10[%c0_26, %c0_27, %c0_28] : memref<1x16x128xbf16, #tpu.memory_space<vmem>>, vector<1x16x128xbf16>
    %45 = vector.shape_cast %44 : vector<1x16x128xbf16> to vector<16x128xbf16>
    %46 = vector.shape_cast %43 : vector<16x128xbf16> to vector<1x16x128xbf16>
    tpu.vector_store %arg10[%c0_26, %c0_27, %c0_28], %46 {strides = array<i32>} : memref<1x16x128xbf16, #tpu.memory_space<vmem>>, vector<1x16x128xbf16>,
    return
  }
  func.func @transform_0(%arg0: i32, %arg1: i32) -> (i32, i32, i32, i32) {
    %c0_i32 = arith.constant 0 : i32
    %c0_i32_0 = arith.constant 0 : i32
    %c0_i32_1 = arith.constant 0 : i32
    return %arg0, %arg1, %c0_i32, %c0_i32_0 : i32, i32, i32, i32
  }
  func.func @transform_1(%arg0: i32, %arg1: i32) -> (i32, i32, i32) {
    %c0_i32 = arith.constant 0 : i32
    %c0_i32_0 = arith.constant 0 : i32
    return %arg0, %arg1, %c0_i32 : i32, i32, i32
  }
  func.func @transform_2(%arg0: i32, %arg1: i32) -> (i32, i32) {
    %c0_i32 = arith.constant 0 : i32
    %c0_i32_0 = arith.constant 0 : i32
    %c0_i32_1 = arith.constant 0 : i32
    return %c0_i32, %c0_i32_0 : i32, i32
  }
  func.func @transform_3(%arg0: i32, %arg1: i32) -> (i32, i32) {
    %c0_i32 = arith.constant 0 : i32
    %c0_i32_0 = arith.constant 0 : i32
    %c0_i32_1 = arith.constant 0 : i32
    return %c0_i32, %c0_i32_0 : i32, i32
  }
  func.func @transform_4(%arg0: i32, %arg1: i32) -> (i32, i32) {
    %c0_i32 = arith.constant 0 : i32
    %c0_i32_0 = arith.constant 0 : i32
    %c0_i32_1 = arith.constant 0 : i32
    return %c0_i32, %c0_i32_0 : i32, i32
  }
  func.func @transform_5(%arg0: i32, %arg1: i32) -> (i32, i32) {
    %c0_i32 = arith.constant 0 : i32
    %c0_i32_0 = arith.constant 0 : i32
    %c0_i32_1 = arith.constant 0 : i32
    return %c0_i32, %c0_i32_0 : i32, i32
  }
  func.func @transform_6(%arg0: i32, %arg1: i32) -> (i32, i32) {
    %c0_i32 = arith.constant 0 : i32
    %c0_i32_0 = arith.constant 0 : i32
    %c0_i32_1 = arith.constant 0 : i32
    return %c0_i32, %c0_i32_0 : i32, i32
  }
  func.func @transform_7(%arg0: i32, %arg1: i32) -> (i32, i32) {
    %c0_i32 = arith.constant 0 : i32
    %c0_i32_0 = arith.constant 0 : i32
    %c0_i32_1 = arith.constant 0 : i32
    return %c0_i32, %c0_i32_0 : i32, i32
  }
  func.func @transform_8(%arg0: i32, %arg1: i32) -> (i32, i32, i32) {
    %c0_i32 = arith.constant 0 : i32
    %c0_i32_0 = arith.constant 0 : i32
    return %arg0, %arg1, %c0_i32 : i32, i32, i32
  }
}

</mosaic_0001>

<bundles_post_ra>
// kernel: tpu_custom_call.1
= control target key start
LH: loop header
LB: loop body
LE: loop exit
PB: predicated region body
PF: predicated region fallthrough
CT: control target
= control target key end

     0   :  { %s2462_s0 = inlined_call_operand.hbm [shape: bf16[2,1,16,128], index: 0, kind: input, shape index: {}]   ;;  %s2463_s1 = inlined_call_operand.hbm [shape: bf16[2,16,128], index: 1, kind: input, shape index: {}]   ;;  %s2464_s2 = inlined_call_operand.hbm [shape: bf16[384,128], index: 2, kind: input, shape index: {}]   ;;  %s2465_s3 = inlined_call_operand.vmem [shape: f32[1,128], index: 3, kind: input, shape index: {}]   ;;  %s2466_s4 = inlined_call_operand.hbm [shape: bf16[384,128], index: 4, kind: input, shape index: {}]   ;;  %s2467_s5 = inlined_call_operand.vmem [shape: f32[1,128], index: 5, kind: input, shape index: {}]   ;;  %s2468_s6 = inlined_call_operand.hbm [shape: bf16[128,128], index: 6, kind: input, shape index: {}]   ;;  %s2469_s7 = inlined_call_operand.vmem [shape: f32[1,128], index: 7, kind: input, shape index: {}]   ;;  %s2470_s8 = inlined_call_operand.hbm [shape: bf16[2,16,128], index: 8, kind: output, shape index: {}]  }
   0x1   :  { %2481 = sst [smem:[#allocation19_spill]] %s2462_s0 }
   0x2   :  { %2482 = sst [smem:[#allocation20_spill]] %s2464_s2 }
   0x3   :  { %2483 = sst [smem:[#allocation21_spill]] %s2466_s4 }
   0x4   :  { %2484 = sst [smem:[#allocation22_spill]] %s2469_s7 }
   0x5   :  { %2485 = sst [smem:[#allocation23_spill]] %s2470_s8 }
   0x6   :  { %13 = vsyncpa [#allocation3], 0 }
   0x7   :  { %15 = vsyncpa [#allocation3 + $0x1], 0 }
   0x8   :  { %16 = vsyncpa [#allocation6], 0 }
   0x9   :  { %18 = vsyncpa [#allocation6 + $0x1], 0 }
   0xa   :  { %19 = vsyncpa [#allocation9], 0 }
   0xb   :  { %20 = vsyncpa [#allocation4], 0 }
   0xc   :  { %22 = vsyncpa [#allocation4 + $0x1], 0  ;;  %s2076_s27 = smov 0   ;;  %s2078_s28 = smov 0  }
   0xd   :  { %s2080_s29 = smov 0   ;;  %s2082_s30 = smov 0  }
   0xe   :  { %s2084_s9 = smov 0   ;;  %s2086_s10 = smov 0  }
   0xf LB: > { %2486 = sst [smem:[#allocation17_spill]] %s1996_s27  ;;  %s2107_s11 = sadd.s32 4294967295, %s2016_s10   ;;  %s2016_s10 = sphi %s2086_s10, %s28_s10   ;;  %s2012_s9 = sphi %s2084_s9, %s2517_s9   ;;  %s2008_s30 = sphi %s2082_s30, %s2516_s30   ;;  %s2004_s29 = sphi %s2080_s29, %s2515_s29   ;;  %s2000_s28 = sphi %s2078_s28, %s2514_s28   ;;  %s1996_s27 = sphi %s2076_s27, %s2513_s27  }
  0x10   : > { %s1377_s12 = sadd.s32 4294967294, %s2016_s10   ;;  %p62_p0 = scmp.ne.s32.totalorder %s2000_s28, %s1996_s27 }
  0x11   : > { %p2471_p1 = scmp.eq.s32.totalorder %s2107_s11, 0  ;;  %p248_p3 = scmp.eq.s32.totalorder %s1377_s12, 1 }
  0x12   : > { %p1378_p5 = scmp.ge.s32.totalorder %s2016_s10, 1  ;;  %p255_p7 = scmp.lt.s32.totalorder %s2016_s10, 3 }
  0x13   : > { %p2116_p4 = por %p2471_p1, %p62_p0  ;;  %p2121_p6 = por %p248_p3, %p62_p0 }
  0x14   : > { %p2126_p8 = pnand %p1378_p5, %p255_p7  ;;  %s2018_s16 = smov [#allocation7]  }
  0x15   : > { %s2487_s13 = scalar_select %p2116_p4, 1, 0 }
  0x16   : > { %s2488_s14 = scalar_select %p2121_p6, 1, 0 }
  0x17   : > { %s2490_s15 = scalar_select %p2126_p8, 1, 0 }
  0x18   : > { %2489 = sst [smem:[#allocation18_spill]] %s2488_s14  ;;  %s267_s17 = sshll.u32 %s2018_s16, 4  ;;  %s2130_s17 = int_to_ptr.vmem [resolvable:$true] %s267_s17 }
  0x19   : > { %p1633_p9 = pneg %p2126_p8  ;;  %s2019_s19 = smov [#allocation8]  }
  0x1a   : > { %s283_s20 = sshll.u32 %s2019_s19, 4  ;;  %s2020_s21 = smov [#allocation10]   ;;  %s2141_s20 = int_to_ptr.vmem [resolvable:$true] %s283_s20 }
  0x1b   : > { %p2137_p11 = pnand %p1633_p9, %p2471_p1  ;;  %s2143_s22 = sshll.u32 %s2020_s21, 4  ;;  %s300_s22 = int_to_ptr.vmem [resolvable:$true] %s2143_s22 }
  0x1c   : > { %s2492_s2 = sld [smem:[#allocation20_spill]] }
  0x1d   : > { %p2153_p13 = pneg %p2137_p11 }
  0x22   : > { %s1778_s25 = scalar_lea.hbm %s2492_s2, 3072 }
  0x23   : > { %p1779_p12 = scmp.ne.s32.totalorder %s2492_s2, %s1778_s25  ;;  %p1785_p5 = scmp.lt.u32.totalorder %s1778_s25, %s2492_s2 }
  0x25   : > { %p1781_p0 = pnand %p2153_p13, %p1779_p12 }
  0x27   : > { %p1782_p3 = pneg %p1781_p0 }
  0x29   : > { %p1787_p7 = pnand %p1785_p5, %p1782_p3 }
  0x2b   : > { %1790 = shalt.err (!%p1787_p7)
}
  0x2c   : > { %s1791_s23 = scalar_lea.vmem %s2130_s17, 3072  ;;  %p1799_p2 = scmp.lt.s32.totalorder %s2130_s17, %s2130_s17 }
  0x2d   : > { %p1792_p9 = scmp.ne.s32.totalorder %s2130_s17, %s1791_s23  ;;  %p1800_p6 = scmp.lt.s32.totalorder %s1791_s23, %s1791_s23 }
  0x2f   : > { %p1794_p10 = pnand %p1792_p9, %p2153_p13  ;;  %p1801_p12 = por %p1800_p6, %p1799_p2 }
  0x31   : > { %p1795_p1 = pneg %p1794_p10 }
  0x33   : > { %p1802_p0 = pnand %p1801_p12, %p1795_p1 }
  0x35   : > { %1805 = shalt.err (!%p1802_p0)
}
  0x36   : > { %s2477_s24 = smov 64   ;;  %s2479_s25 = smov 4  }
  0x37   : > { %1636 = dma.hbm_to_vmem [thread:$0]  (!%p2137_p11), %s2492_s2, 3072, %s2130_s17, [#allocation6], %s2477_s24, %s2477_s24, %s2479_s25  }
  0x38   : > { %s2494_s4 = sld [smem:[#allocation21_spill]] }
  0x3e   : > { %s1806_s23 = scalar_lea.hbm %s2494_s4, 3072 }
  0x3f   : > { %p1807_p1 = scmp.ne.s32.totalorder %s2494_s4, %s1806_s23  ;;  %p1813_p10 = scmp.lt.u32.totalorder %s1806_s23, %s2494_s4 }
  0x41   : > { %p1809_p2 = pnand %p1807_p1, %p2153_p13 }
  0x43   : > { %p1810_p6 = pneg %p1809_p2 }
  0x45   : > { %p1815_p3 = pnand %p1813_p10, %p1810_p6 }
  0x47   : > { %1818 = shalt.err (!%p1815_p3)
}
  0x48   : > { %s1819_s17 = scalar_lea.vmem %s2141_s20, 3072  ;;  %p1827_p12 = scmp.lt.s32.totalorder %s2141_s20, %s2141_s20 }
  0x49   : > { %p1820_p5 = scmp.ne.s32.totalorder %s2141_s20, %s1819_s17  ;;  %p1828_p0 = scmp.lt.s32.totalorder %s1819_s17, %s1819_s17 }
  0x4b   : > { %p1822_p7 = pnand %p1820_p5, %p2153_p13  ;;  %p1829_p1 = por %p1828_p0, %p1827_p12 }
  0x4d   : > { %p1823_p9 = pneg %p1822_p7 }
  0x4f   : > { %p1830_p2 = pnand %p1829_p1, %p1823_p9 }
  0x51   : > { %1833 = shalt.err (!%p1830_p2)
}
  0x52   : > { %1639 = dma.hbm_to_vmem [thread:$0]  (!%p2137_p11), %s2494_s4, 3072, %s2141_s20, [#allocation9], %s2477_s24, %s2477_s24, %s2479_s25  }
  0x53   : > { %s1834_s26 = scalar_lea.hbm %s2468_s6, 1024 }
  0x54   : > { %p1835_p6 = scmp.ne.s32.totalorder %s2468_s6, %s1834_s26  ;;  %p1841_p5 = scmp.lt.u32.totalorder %s1834_s26, %s2468_s6 }
  0x56   : > { %p1837_p10 = pnand %p1835_p6, %p2153_p13 }
  0x58   : > { %p1838_p3 = pneg %p1837_p10 }
  0x5a   : > { %p1843_p7 = pnand %p1841_p5, %p1838_p3 }
  0x5c   : > { %1846 = shalt.err (!%p1843_p7)
}
  0x5d   : > { %s1847_s17 = scalar_lea.vmem %s300_s22, 1024  ;;  %p1855_p1 = scmp.lt.s32.totalorder %s300_s22, %s300_s22 }
  0x5e   : > { %p1848_p9 = scmp.ne.s32.totalorder %s300_s22, %s1847_s17  ;;  %p1856_p2 = scmp.lt.s32.totalorder %s1847_s17, %s1847_s17 }
  0x60   : > { %p1850_p12 = pnand %p1848_p9, %p2153_p13  ;;  %p1857_p4 = por %p1856_p2, %p1855_p1 }
  0x62   : > { %p1851_p0 = pneg %p1850_p12 }
  0x64   : > { %p1858_p8 = pnand %p1857_p4, %p1851_p0 }
  0x66   : > { %1861 = shalt.err (!%p1858_p8)
}
  0x67   : > { %1642 = dma.hbm_to_vmem [thread:$0]  (!%p2137_p11), %s2468_s6, 1024, %s300_s22, [#allocation9], %s2477_s24, %s2477_s24, %s2479_s25  }
  0x68   : > { %s49_s16 = sadd.s32 1, %s2004_s29  ;;  %s40_s18 = sadd.s32 1, %s2012_s9 }
  0x69   : > { %p56_p4 = scmp.ne.s32.totalorder %s2004_s29, %s2000_s28  ;;  %p42_p8 = scmp.ge.s32.totalorder %s40_s18, 2 }
  0x6a   : > { %p57_p13 = scmp.eq.s32.totalorder %s2016_s10, 0  ;;  %p2495_p6 = scmp.eq.s32.totalorder %s2107_s11, 1 }
  0x6b   : > { %p1657_p3 = scmp.lt.s32.totalorder %s2016_s10, 2  ;;  %s2519_s18 = smov (%p42_p8, %s40_s18), 0 }
  0x6c   : > { %p2232_p10 = por %p2495_p6, %p56_p4  ;;  %p58_p5 = por %p57_p13, %p56_p4 }
  0x6d   : > { %s316_s27 = sand.u32 1, %s2004_s29   ;;  %s44_s14 = ssub.s32 %s2012_s9, %s2519_s18 }
  0x6e   : > { %p47_p7 = scmp.eq.s32.totalorder %s44_s14, 0  ;;  %s1383_s22 = sshll.u32 %s316_s27, 3 }
  0x6f   : > { %s1464_s26 = sshll.u32 %s2012_s9, 7  ;;  %s2497_s0 = sld [smem:[#allocation19_spill]] }
  0x70   : > { %s2244_s12 = scalar_select %p47_p7, %s2004_s29, %s49_s16  }
  0x71   : > { %s320_s17 = scalar_lea.vmem [#allocation2], %s1383_s22  ;;  %p2255_p11 = pnand %p1657_p3, %p58_p5 }
  0x72   : > { %s329_s20 = sshll.u32 %s320_s17, 4  ;;  %s2262_s19 = scalar_lea.hbm %s2463_s1, %s1464_s26  ;;  %s2251_s20 = int_to_ptr.vmem [resolvable:$true] %s329_s20 }
  0x73   : > { %s343_s21 = scalar_lea.vmem [#allocation5], %s1383_s22  ;;  %s2266_s25 = scalar_lea.sflag [#allocation3], %s316_s27 }
  0x74   : > { %s2264_s24 = sshll.u32 %s343_s21, 4  ;;  %p1864_p12 = pneg %p2255_p11  ;;  %s2298_s24 = int_to_ptr.vmem [resolvable:$true] %s2264_s24 }
  0x75   : > { %s2249_s23 = scalar_lea.hbm %s2497_s0, %s1464_s26  ;;  %s1867_s16 = scalar_lea.hbm %s2497_s0, 256 }
  0x76   : > { %s1862_s17 = scalar_lea.hbm %s2249_s23, 128  ;;  %p1868_p2 = scmp.lt.u32.totalorder %s2249_s23, %s2497_s0 }
  0x77   : > { %p1863_p9 = scmp.ne.s32.totalorder %s2249_s23, %s1862_s17  ;;  %p1869_p4 = scmp.lt.u32.totalorder %s1867_s16, %s1862_s17 }
  0x78   : > { %p1871_p13 = scmp.lt.u32.totalorder %s1862_s17, %s2249_s23 }
  0x79   : > { %p1865_p0 = pnand %p1864_p12, %p1863_p9  ;;  %p1870_p8 = por %p1869_p4, %p1868_p2 }
  0x7b   : > { %p1866_p1 = pneg %p1865_p0  ;;  %p1872_p6 = por %p1871_p13, %p1870_p8 }
  0x7d   : > { %p1873_p3 = pnand %p1872_p6, %p1866_p1 }
  0x7f   : > { %1876 = shalt.err (!%p1873_p3)
}
  0x80   : > { %s1877_s27 = scalar_lea.vmem %s2251_s20, 128  ;;  %s2023_s2 = smov [#allocation2]  }
  0x81   : > { %p1878_p5 = scmp.ne.s32.totalorder %s2251_s20, %s1877_s27  ;;  %s1882_s4 = sshll.u32 %s2023_s2, 4  ;;  %s1883_s4 = int_to_ptr.vmem [resolvable:$false] %s1882_s4 }
  0x82   : > { %s1884_s22 = scalar_lea.vmem %s1883_s4, 256  ;;  %p1885_p0 = scmp.lt.s32.totalorder %s2251_s20, %s1883_s4 }
  0x83   : > { %p1880_p7 = pnand %p1878_p5, %p1864_p12  ;;  %p1886_p2 = scmp.lt.s32.totalorder %s1884_s22, %s1877_s27 }
  0x85   : > { %p1881_p9 = pneg %p1880_p7  ;;  %p1887_p4 = por %p1886_p2, %p1885_p0 }
  0x87   : > { %p1888_p8 = pnand %p1887_p4, %p1881_p9 }
  0x89   : > { %1891 = shalt.err (!%p1888_p8)
}
  0x8a   : > { %s2499_s21 = smov 4   ;;  %s2500_s17 = smov 64  }
  0x8b   : > { %1646 = dma.hbm_to_vmem [thread:$0]  (!%p2255_p11), %s2249_s23, 128, %s2251_s20, %s2266_s25, %s2500_s17, %s2500_s17, %s2499_s21  }
  0x8c   : > { %s339_s16 = sand.u32 1, %s2016_s10   ;;  %s1892_s26 = scalar_lea.hbm %s2262_s19, 128 }
  0x8d   : > { %s2301_s14 = scalar_lea.sflag [#allocation6], %s339_s16  ;;  %p1893_p1 = scmp.ne.s32.totalorder %s2262_s19, %s1892_s26 }
  0x8e   : > { %s1897_s4 = scalar_lea.hbm %s2463_s1, 256  ;;  %p1898_p3 = scmp.lt.u32.totalorder %s2262_s19, %s2463_s1 }
  0x8f   : > { %p1895_p13 = pnand %p1893_p1, %p1864_p12  ;;  %p1899_p5 = scmp.lt.u32.totalorder %s1897_s4, %s1892_s26 }
  0x90   : > { %p1901_p9 = scmp.lt.u32.totalorder %s1892_s26, %s2262_s19 }
  0x91   : > { %p1896_p6 = pneg %p1895_p13  ;;  %p1900_p7 = por %p1899_p5, %p1898_p3 }
  0x93   : > { %p1902_p0 = por %p1901_p9, %p1900_p7 }
  0x95   : > { %p1903_p2 = pnand %p1902_p0, %p1896_p6 }
  0x97   : > { %1906 = shalt.err (!%p1903_p2)
}
  0x98   : > { %s1907_s25 = scalar_lea.vmem %s2298_s24, 128  ;;  %s2024_s23 = smov [#allocation5]  }
  0x99   : > { %p1908_p4 = scmp.ne.s32.totalorder %s2298_s24, %s1907_s25  ;;  %s1912_s20 = sshll.u32 %s2024_s23, 4  ;;  %s1913_s20 = int_to_ptr.vmem [resolvable:$false] %s1912_s20 }
  0x9a   : > { %s1914_s0 = scalar_lea.vmem %s1913_s20, 256  ;;  %p1915_p13 = scmp.lt.s32.totalorder %s2298_s24, %s1913_s20 }
  0x9b   : > { %p1910_p8 = pnand %p1908_p4, %p1864_p12  ;;  %p1916_p3 = scmp.lt.s32.totalorder %s1914_s0, %s1907_s25 }
  0x9d   : > { %p1911_p1 = pneg %p1910_p8  ;;  %p1917_p5 = por %p1916_p3, %p1915_p13 }
  0x9f   : > { %p1918_p7 = pnand %p1917_p5, %p1911_p1 }
  0xa1   : > { %1921 = shalt.err (!%p1918_p7)
}
  0xa2   : > { %1649 = dma.hbm_to_vmem [thread:$0]  (!%p2255_p11), %s2262_s19, 128, %s2298_s24, %s2301_s14, %s2500_s17, %s2500_s17, %s2499_s21  }
  0xa3   : > { %p2501_p12 = scmp.ne.s32.totalorder %s2490_s15, 0 }
  0xa4   : > { %s2333_s16 = sand.u32 (!%p2501_p12), 1, %s2000_s28   ;;  %p2502_p6 = scmp.ne.s32.totalorder (!%p2501_p12), %s2487_s13, 0 }
  0xa5   : > { %364 = sbr.rel (%p2501_p12) target bundleno = 720 (0x2d0), region = 52  ;;  %s2336_s26 = sshll.u32 (!%p2501_p12), %s2333_s16, 3 }
  0xa6   : > { %s367_s7 = scalar_lea.sflag (!%p2501_p12), [#allocation3], %s2333_s16  ;;  %s370_s27 = scalar_lea.vmem (!%p2501_p12), [#allocation2], %s2336_s26 }
  0xac   : > { %1975 = dma.done.wait (%p2502_p6), %s367_s7, 128  }
  0xad   : > { %1977 = vsyncadd (%p2502_p6), %s367_s7, 4294967168  ;;  %s375_s15 = sand.u32 1, %s2107_s11   ;;  %s379_s19 = scalar_lea.vmem [#allocation5], %s2336_s26 }
  0xae   : > { %s376_s24 = scalar_lea.sflag [#allocation6], %s375_s15 }
  0xaf   : > { %1979 = dma.done.wait (%p2502_p6), %s376_s24, 128  }
  0xb0   : > { %1981 = vsyncadd (%p2502_p6), %s376_s24, 4294967168  ;;  %p2503_p11 = scmp.eq.s32.totalorder %s2107_s11, 0 }
  0xb2   : > { %1983 = dma.done.wait (%p2503_p11), [#allocation6], 3072   ;;  %p2504_p9 = pmov %p2503_p11 }
  0xb4   : > { %1985 = vsyncadd (%p2504_p9), [#allocation6], 4294964224  ;;  %p2505_p0 = pmov %p2504_p9 }
  0xb6   : > { %1987 = dma.done.wait (%p2505_p0), [#allocation9], 4096   ;;  %p2506_p2 = pmov %p2505_p0 }
  0xb7   : > { %v1720_v0 = vld [vmem:[#allocation7 + $0x40] sm:$0xff]   ;;  %v1722_v2 = vld [vmem:[#allocation7 + $0x48] sm:$0xff]   ;;  %v1725_v5 = vld [vmem:[#allocation7 + $0x50] sm:$0xff]   ;;  %vm446_vm0 = vcmask 1046528   ;;  %vm509_vm1 = vcmask 1043456   ;;  %vm450_vm2 = vcmask 1045504  }
  0xb8   : > { %1989 = vsyncadd (%p2506_p2), [#allocation9], 4294963200  ;;  %v1721_v1 = vld [vmem:[#allocation7] sm:$0xff]   ;;  %1477 = vmatprep.subr.bf16.mxu0 %v1720_v0  ;;  %v1724_v4 = vld [vmem:[#allocation7 + $0x8] sm:$0xff]   ;;  %v2025_v46 = vmov 0.0   ;;  %vm2026_vm3 = vmmov 0  }
  0xb9   : > { %1478 = vmatpush3.bf16.msra.mxu0 %v1721_v1  ;;  %v1723_v3 = vld [vmem:[#allocation7 + $0x80] sm:$0xff]   ;;  %v1726_v6 = vld [vmem:[#allocation7 + $0x88] sm:$0xff]   ;;  %v1727_v7 = vld [vmem:[#allocation7 + $0x10] sm:$0xff]   ;;  %vm2027_vm5 = vmmov 1   ;;  %s2507_s4 = sld [smem:[#allocation22_spill]]  ;;  %s1468_s22 = sshll.u32 %s2008_s30, 7 }
  0xba   : > { %1479 = vmatprep.subr.bf16.mxu0 %v1722_v2  ;;  %1555 = vmatprep.subr.bf16.mxu1 %v1723_v3  ;;  %v1728_v8 = vld [vmem:[#allocation7 + $0x58] sm:$0xff]   ;;  %v1729_v9 = vld [vmem:[#allocation7 + $0x90] sm:$0xff]   ;;  %v1731_v11 = vld [vmem:[#allocation7 + $0x60] sm:$0xff]   ;;  %v773_v2 = vlaneseq  ;;  %s428_s25 = scalar_lea.vmem [#allocation11], %s2336_s26  ;;  %s2508_s7 = sld [smem:[#allocation23_spill]] }
  0xbb   : > { %1556 = vmatpush3.bf16.msra.mxu1 %v1723_v3  ;;  %v1730_v10 = vld [vmem:[#allocation7 + $0x18] sm:$0xff]   ;;  %v1733_v13 = vld [vmem:[#allocation7 + $0x20] sm:$0xff]   ;;  %v1734_v15 = vld [vmem:[#allocation7 + $0x68] sm:$0xff]   ;;  %s1235_s23 = sshll.u32 %s428_s25, 4  ;;  %s1220_s15 = scalar_lea.sflag [#allocation4], %s2333_s16  ;;  %s2413_s23 = int_to_ptr.vmem [resolvable:$true] %s1235_s23 }
  0xbc   : > { %1557 = vmatprep.subr.bf16.mxu1 %v1726_v6  ;;  %v1732_v12 = vld [vmem:[#allocation7 + $0x98] sm:$0xff]   ;;  %v1735_v14 = vld [vmem:[#allocation7 + $0xa0] sm:$0xff]   ;;  %v1736_v16 = vld [vmem:[#allocation7 + $0x28] sm:$0xff]   ;;  %v774_v3 = vshrl.u32 %v773_v2, 7  ;;  %s1922_s24 = scalar_lea.vmem %s2413_s23, 128  ;;  %s2028_s30 = smov [#allocation11]  }
  0xbd   : > { %1480 = vmatpush3.bf16.msra.mxu0 %v1724_v4  ;;  %v1738_v17 = vld [vmem:[#allocation7 + $0xa8] sm:$0xff]   ;;  %v1737_v18 = vld [vmem:[#allocation7 + $0x70] sm:$0xff]   ;;  %v1740_v20 = vld [vmem:[#allocation7 + $0x78] sm:$0xff]   ;;  %p1923_p4 = scmp.ne.s32.totalorder %s2413_s23, %s1922_s24  ;;  %s1926_s26 = sshll.u32 %s2028_s30, 4  ;;  %s1927_s26 = int_to_ptr.vmem [resolvable:$false] %s1926_s26 }
  0xbe   : > { %1481 = vmatprep.subr.bf16.mxu0 %v1725_v5  ;;  %v1739_v19 = vld [vmem:[#allocation7 + $0x30] sm:$0xff]   ;;  %v1743_v22 = vld [vmem:[%s370_s27] sm:$0xff]   ;;  %v1742_v24 = vld [vmem:[#allocation7 + $0x38] sm:$0xff]   ;;  %p1929_p13 = scmp.lt.s32.totalorder %s2413_s23, %s1927_s26 }
  0xbf   : > { %1558 = vmatpush3.bf16.msra.mxu1 %v1726_v6  ;;  %v1741_v21 = vld [vmem:[#allocation7 + $0xb0] sm:$0xff]   ;;  %v447_v25 = vrot.slane %v1743_v22, 1  ;;  %v1745_v27 = vld [vmem:[#allocation7 + $0xb8] sm:$0xff]   ;;  %v510_v28 = vrot.slane %v1743_v22, 4  ;;  %v451_v30 = vrot.slane %v1743_v22, 2  ;;  %v1746_v34 = vld [vmem:[#allocation8 + $0x40] sm:$0xff]   ;;  %p1924_p8 = pnand %p1923_p4, %p2232_p10 }
  0xc0   : > { %1559 = vmatprep.subr.bf16.mxu1 %v1729_v9  ;;  %v2362_v23 = vld [vmem:[%s379_s19] sm:$0xff]   ;;  %v1747_v41 = vld [vmem:[#allocation8] sm:$0xff]   ;;  %v1749_v44 = vld [vmem:[#allocation8 + $0x48] sm:$0xff]   ;;  %s2411_s27 = scalar_lea.hbm %s2508_s7, %s1468_s22  ;;  %s1928_s19 = scalar_lea.vmem %s1927_s26, 256 }
  0xc1   : > { %1482 = vmatpush3.bf16.msra.mxu0 %v1727_v7  ;;  %v448_v26 = vrot.slane %v2362_v23, 1  ;;  %v511_v29 = vrot.slane %v2362_v23, 4  ;;  %v452_v31 = vrot.slane %v2362_v23, 2  ;;  %v1748_v43 = vld [vmem:[#allocation8 + $0x80] sm:$0xff]   ;;  %v1750_v45 = vld [vmem:[#allocation8 + $0x8] sm:$0xff]   ;;  %v1752_v47 = vld [vmem:[#allocation8 + $0x50] sm:$0xff]   ;;  %p1925_p1 = pneg %p1924_p8  ;;  %p1930_p3 = scmp.lt.s32.totalorder %s1928_s19, %s1922_s24 }
  0xc2   : > { %1483 = vmatprep.subr.bf16.mxu0 %v1728_v8  ;;  %v1751_v48 = vld [vmem:[#allocation8 + $0x88] sm:$0xff]   ;;  %v1753_v49 = vld [vmem:[#allocation8 + $0x10] sm:$0xff]   ;;  %v1755_v51 = vld [vmem:[#allocation8 + $0x58] sm:$0xff]  }
  0xc3   : > { %1560 = vmatpush3.bf16.msra.mxu1 %v1729_v9  ;;  %v449_v32 = vsel %vm446_vm0, %v447_v25, %v448_v26  ;;  %v514_v33 = vrot.slane %v448_v26, 4  ;;  %v453_v36 = vsel %vm450_vm2, %v451_v30, %v452_v31  ;;  %v517_v37 = vrot.slane %v452_v31, 4  ;;  %v1754_v50 = vld [vmem:[#allocation8 + $0x90] sm:$0xff]   ;;  %v1756_v52 = vld [vmem:[#allocation8 + $0x18] sm:$0xff]   ;;  %v1758_v54 = vld [vmem:[#allocation8 + $0x60] sm:$0xff]   ;;  %p1931_p5 = por %p1930_p3, %p1929_p13 }
  0xc4   : > { %1561 = vmatprep.subr.bf16.mxu1 %v1732_v12  ;;  %v513_v35 = vrot.slane %v449_v32, 4  ;;  %v516_v38 = vrot.slane %v453_v36, 4  ;;  %v512_v40 = vsel %vm509_vm1, %v510_v28, %v511_v29  ;;  %v1757_v53 = vld [vmem:[#allocation8 + $0x98] sm:$0xff]   ;;  %v1759_v55 = vld [vmem:[#allocation8 + $0x20] sm:$0xff]   ;;  %v1761_v57 = vld [vmem:[#allocation8 + $0x68] sm:$0xff]  }
  0xc5   : > { %1484 = vmatpush3.bf16.msra.mxu0 %v1730_v10  ;;  %v1760_v56 = vld [vmem:[#allocation8 + $0xa0] sm:$0xff]   ;;  %v1762_v58 = vld [vmem:[#allocation8 + $0x28] sm:$0xff]   ;;  %v1764_v60 = vld [vmem:[#allocation8 + $0x70] sm:$0xff]   ;;  %p1932_p7 = pnand %p1931_p5, %p1925_p1 }
  0xc6   : > { %1485 = vmatprep.subr.bf16.mxu0 %v1731_v11  ;;  %v515_v39 = vsel %vm509_vm1, %v513_v35, %v514_v33  ;;  %v518_v42 = vsel %vm509_vm1, %v516_v38, %v517_v37  ;;  %v1763_v59 = vld [vmem:[#allocation8 + $0xa8] sm:$0xff]   ;;  %v1765_v61 = vld [vmem:[#allocation8 + $0x30] sm:$0xff]   ;;  %v1767_v63 = vld [vmem:[#allocation8 + $0x78] sm:$0xff]   ;;  %v779_v11 = vadd.s32 4294967292, %v774_v3 }
  0xc7   : > { %1562 = vmatpush3.bf16.msra.mxu1 %v1732_v12  ;;  %701 = vmatprep.mubr.bf16.mxu0 %v515_v39  ;;  %v1766_v62 = vld [vmem:[#allocation8 + $0xb0] sm:$0xff]   ;;  %v1768_v0 = vld [vmem:[#allocation8 + $0x38] sm:$0xff]   ;;  %v1398_v6 = vld [vmem:[%s2465_s3] ss:$0 sm:$0xff] }
  0xc8   : > { %1563 = vmatprep.subr.bf16.mxu1 %v1735_v14  ;;  %1571 = vmatprep.mubr.bf16.mxu1 %v518_v42  ;;  %v1769_v1 = vld [vmem:[#allocation8 + $0xb8] sm:$0xff]   ;;  %vm782_vm4 = vcmp.ge.s32.totalorder %v779_v11, 0  ;;  %v1770_v39 = vld [vmem:[#allocation10] sm:$0xff]   ;;  %v1771_v42 = vld [vmem:[#allocation10 + $0x8] sm:$0xff]  }
  0xc9   : > { %1486 = vmatpush3.bf16.msra.mxu0 %v1733_v13  ;;  %vm1474_vm6 = vmpackc.low %vm2027_vm5, %vm782_vm4 }
  0xca   : > { %1487 = vmatprep.subr.bf16.mxu0 %v1734_v15 }
  0xcb   : > { %1564 = vmatpush3.bf16.msra.mxu1 %v1735_v14 }
  0xcc   : > { %1565 = vmatprep.subr.bf16.mxu1 %v1738_v17 }
  0xcd   : > { %1488 = vmatpush3.bf16.msra.mxu0 %v1736_v16 }
  0xce   : > { %1489 = vmatprep.subr.bf16.mxu0 %v1737_v18 }
  0xcf   : > { %1566 = vmatpush3.bf16.msra.mxu1 %v1738_v17 }
  0xd0   : > { %1567 = vmatprep.subr.bf16.mxu1 %v1741_v21 }
  0xd1   : > { %1490 = vmatpush3.bf16.msra.mxu0 %v1739_v19 }
  0xd2   : > { %1491 = vmatprep.subr.bf16.mxu0 %v1740_v20 }
  0xd3   : > { %1568 = vmatpush3.bf16.msra.mxu1 %v1741_v21 }
  0xd4   : > { %1569 = vmatprep.subr.bf16.mxu1 %v1745_v27 }
  0xd5   : > { %1492 = vmatpush3.bf16.msra.mxu0 %v1742_v24 }
  0xd6   : > { %1515 = vmatprep.subr.bf16.mxu0 %v1746_v34 }
  0xd7   : > { %1570 = vmatpush3.bf16.msra.mxu1 %v1745_v27 }
  0xd8   : > { %702 = vmatmul.mubr.bf16.vlgmr.msra.gmra.mrb[0].mxu0 %v512_v40  ;;  %1575 = vmatprep.subr.bf16.mxu1 %v2025_v46 }
  0xd9   : > { %709 = vmatprep.mubr.bf16.mxu0 %v514_v33  ;;  %1516 = vmatpush3.bf16.msra.mxu0 %v1747_v41 }
  0xda   : > { %1572 = vmatmul.mubr.bf16.vlgmr.msra.gmra.mrb[0].mxu1 %v517_v37  ;;  %1517 = vmatprep.subr.bf16.mxu0 %v1749_v44  ;;  %v1773_v44 = vld [vmem:[#allocation10 + $0x18] sm:$0xff]  }
  0xdb   : > { %1576 = vmatpush3.bf16.msra.mxu1 %v1748_v43  ;;  %1591 = vmatprep.mubr.msk.bf16.mxu1 %vm2026_vm3, %v2025_v46  ;;  %v1772_v43 = vld [vmem:[#allocation10 + $0x10] sm:$0xff]  }
  0xdc   : > { %1577 = vmatprep.subr.bf16.mxu1 %v2025_v46 }
  0xdd   : > { %1518 = vmatpush3.bf16.msra.mxu0 %v1750_v45  ;;  %v1774_v45 = vld [vmem:[#allocation10 + $0x20] sm:$0xff]  }
  0xde   : > { %1519 = vmatprep.subr.bf16.mxu0 %v1752_v47  ;;  %v1775_v47 = vld [vmem:[#allocation10 + $0x28] sm:$0xff]  }
  0xdf   : > { %1578 = vmatpush3.bf16.msra.mxu1 %v1751_v48  ;;  %v1776_v48 = vld [vmem:[#allocation10 + $0x30] sm:$0xff]  }
  0xe0   : > { %710 = vmatmul.mubr.bf16.gmra.mrb[4].mxu0 %v511_v29  ;;  %1579 = vmatprep.subr.bf16.mxu1 %v2025_v46 }
  0xe1   : > { %1520 = vmatpush3.bf16.msra.mxu0 %v1753_v49  ;;  %v1777_v49 = vld [vmem:[#allocation10 + $0x38] sm:$0xff]  }
  0xe2   : > { %1521 = vmatprep.subr.bf16.mxu0 %v1755_v51 }
  0xe3   : > { %1580 = vmatpush3.bf16.msra.mxu1 %v1754_v50 }
  0xe4   : > { %1581 = vmatprep.subr.bf16.mxu1 %v2025_v46 }
  0xe5   : > { %1522 = vmatpush3.bf16.msra.mxu0 %v1756_v52 }
  0xe6   : > { %1523 = vmatprep.subr.bf16.mxu0 %v1758_v54 }
  0xe7   : > { %1582 = vmatpush3.bf16.msra.mxu1 %v1757_v53  ;;  %v1423_v53 = vld [vmem:[%s2467_s5] ss:$0 sm:$0xff] }
  0xe8   : > { %1583 = vmatprep.subr.bf16.mxu1 %v2025_v46 }
  0xe9   : > { %1524 = vmatpush3.bf16.msra.mxu0 %v1759_v55 }
  0xea   : > { %1525 = vmatprep.subr.bf16.mxu0 %v1761_v57 }
  0xeb   : > { %1584 = vmatpush3.bf16.msra.mxu1 %v1760_v56 }
  0xec   : > { %1585 = vmatprep.subr.bf16.mxu1 %v2025_v46 }
  0xed   : > { %1526 = vmatpush3.bf16.msra.mxu0 %v1762_v58 }
  0xee   : > { %1527 = vmatprep.subr.bf16.mxu0 %v1764_v60 }
  0xef   : > { %1586 = vmatpush3.bf16.msra.mxu1 %v1763_v59 }
  0xf0   : > { %1587 = vmatprep.subr.bf16.mxu1 %v2025_v46 }
  0xf1   : > { %1528 = vmatpush3.bf16.msra.mxu0 %v1765_v61 }
  0xf2   : > { %1529 = vmatprep.subr.bf16.mxu0 %v1767_v63  ;;  %v1448_v63 = vld [vmem:[%s2507_s4] ss:$0 sm:$0xff] }
  0xf3   : > { %1588 = vmatpush3.bf16.msra.mxu1 %v1766_v62 }
  0xf4   : > { %1589 = vmatprep.subr.bf16.mxu1 %v2025_v46 }
  0xf5   : > { %1530 = vmatpush3.bf16.msra.mxu0 %v1768_v0 }
  0xf6   : > { %1595 = vmatprep.subr.bf16.mxu0 %v2025_v46 }
  0xf7   : > { %1590 = vmatpush3.bf16.msra.mxu1 %v1769_v1 }
 0x1ab   : > { %v1493_v4 = vpop.f32.mrb[0].mxu0 }
 0x1ac   : > { %v1494_v5 = vpop.f32.mrb[1].mxu0 }
 0x1ad   : > { %v1495_v7 = vadd.f32 %v1494_v5, %v1493_v4  ;;  %v1496_v8 = vpop.f32.mrb[2].mxu0  ;;  %v1573_v10 = vpop.f32.mrb[0].mxu1 }
 0x1ae   : > { %v1497_v9 = vpop.f32.mrb[3].mxu0  ;;  %v751_v14 = vpop.f32.mrb[1].mxu1 }
 0x1af   : > { %v1498_v12 = vadd.f32 %v1497_v9, %v1496_v8  ;;  %v704_v13 = vadd.f32 %v1495_v7, %v1398_v6  ;;  %v1574_v15 = vpop.f32.mrb[2].mxu1 }
 0x1b0   : > { %v754_v18 = vpop.f32.mrb[3].mxu1 }
 0x1b1   : > { %v752_v16 = vadd.f32 %v751_v14, %v704_v13  ;;  %v707_v17 = vadd.f32 %v1498_v12, %v1398_v6 }
 0x1b3   : > { %v765_v19 = vmax.f32 %v752_v16, 0.0  ;;  %v755_v20 = vadd.f32 %v754_v18, %v707_v17  ;;  %v1499_v21 = vpop.f32.mrb[4].mxu0 }
 0x1b4   : > { %v1500_v22 = vpop.f32.mrb[5].mxu0 }
 0x1b5   : > { %v785_v24 = vsel %vm782_vm4, %v765_v19, 0.0  ;;  %v766_v25 = vmax.f32 %v755_v20, 0.0  ;;  %v1501_v26 = vadd.f32 %v1500_v22, %v1499_v21  ;;  %v1502_v27 = vpop.f32.mrb[6].mxu0 }
 0x1b6   : > { %v1503_v28 = vpop.f32.mrb[7].mxu0 }
 0x1b7   : > { %v797_v29 = vpack.c.bf16 %v766_v25, %v785_v24  ;;  %v1475_v30 = vpack.c.bf16 %v766_v25, %v765_v19  ;;  %v712_v31 = vadd.f32 %v1501_v26, %v1398_v6 }
 0x1b9   : > { %v760_v32 = vadd.f32 %v1573_v10, %v712_v31  ;;  %v801_v35 = vrot.slane %v797_v29, 1  ;;  %v805_v36 = vrot.slane %v797_v29, 2 }
 0x1bb   : > { %v767_v33 = vmax.f32 %v760_v32, 0.0 }
 0x1bd   : > { %v798_v34 = vpack.c.bf16 %v767_v33, %v767_v33 }
 0x1bf   : > { %v806_v37 = vrot.slane %v798_v34, 2  ;;  %v802_v38 = vrot.slane %v798_v34, 1 }
 0x1c1   : > { %v803_v40 = vsel %vm446_vm0, %v801_v35, %v802_v38  ;;  %v807_v41 = vsel %vm450_vm2, %v805_v36, %v806_v37 }
 0x1c2   : > { %1040 = vmatprep.mubr.bf16.mxu0 %v803_v40  ;;  %1592 = vmatmul.mubr.bf16.vlgmr.msra.gmra.mrb[4].mxu1 %v807_v41 }
 0x1c3   : > { %1476 = vmatmul.mubr.msk.bf16.vlgmr.msra.gmra.mrb[8].mxu0 %vm1474_vm6, %v1475_v30 }
 0x1c4   : > { %1596 = vmatpush3.bf16.msra.mxu0 %v1770_v39  ;;  %1611 = vmatprep.mubr.msk.bf16.mxu0 %vm2026_vm3, %v2025_v46 }
 0x1c5   : > { %1597 = vmatprep.subr.bf16.mxu0 %v2025_v46 }
 0x1c8   : > { %1598 = vmatpush3.bf16.msra.mxu0 %v1771_v42 }
 0x1c9   : > { %1599 = vmatprep.subr.bf16.mxu0 %v2025_v46 }
 0x1cc   : > { %1600 = vmatpush3.bf16.msra.mxu0 %v1772_v43 }
 0x1cd   : > { %1601 = vmatprep.subr.bf16.mxu0 %v2025_v46 }
 0x1d0   : > { %1602 = vmatpush3.bf16.msra.mxu0 %v1773_v44 }
 0x1d1   : > { %1603 = vmatprep.subr.bf16.mxu0 %v2025_v46 }
 0x1d4   : > { %1604 = vmatpush3.bf16.msra.mxu0 %v1774_v45 }
 0x1d5   : > { %1605 = vmatprep.subr.bf16.mxu0 %v2025_v46 }
 0x1d8   : > { %1606 = vmatpush3.bf16.msra.mxu0 %v1775_v47 }
 0x1d9   : > { %1607 = vmatprep.subr.bf16.mxu0 %v2025_v46 }
 0x1dc   : > { %1608 = vmatpush3.bf16.msra.mxu0 %v1776_v48 }
 0x1dd   : > { %1609 = vmatprep.subr.bf16.mxu0 %v2025_v46 }
 0x1e0   : > { %1610 = vmatpush3.bf16.msra.mxu0 %v1777_v49 }
 0x1e3   : > { %1612 = vmatmul.mubr.bf16.vlgmr.msra.gmra.mrb[12].mxu0 %v2362_v23 }
 0x295   : > { %v1083_v50 = vpop.f32.mrb[4].mxu1 }
 0x296   : > { %v1531_v51 = vpop.f32.mrb[8].mxu0  ;;  %v1593_v52 = vpop.f32.mrb[5].mxu1 }
 0x297   : > { %v1532_v54 = vpop.f32.mrb[9].mxu0  ;;  %v1086_v55 = vpop.f32.mrb[6].mxu1 }
 0x298   : > { %v1533_v56 = vadd.f32 %v1532_v54, %v1531_v51  ;;  %v1534_v57 = vpop.f32.mrb[10].mxu0  ;;  %v1594_v58 = vpop.f32.mrb[7].mxu1 }
 0x299   : > { %v1535_v59 = vpop.f32.mrb[11].mxu0 }
 0x29a   : > { %v1043_v60 = vadd.f32 %v1533_v56, %v1423_v53  ;;  %v1536_v61 = vadd.f32 %v1535_v59, %v1534_v57 }
 0x29c   : > { %v1084_v46 = vadd.f32 %v1083_v50, %v1043_v60  ;;  %v1046_v62 = vadd.f32 %v1536_v61, %v1423_v53 }
 0x29e   : > { %v1087_v23 = vadd.f32 %v1086_v55, %v1046_v62  ;;  %v1090_v1 = vmax.f32 %v1084_v46, 0.0 }
 0x2a0   : > { %v1091_v6 = vmax.f32 %v1087_v23, 0.0 }
 0x2b6   : > { %v1198_v0 = vpop.f32.mrb[12].mxu0 }
 0x2b7   : > { %v1199_v2 = vadd.f32 %v1448_v63, %v1198_v0  ;;  %v1613_v3 = vpop.f32.mrb[13].mxu0 }
 0x2b8   : > { %v1201_v4 = vpop.f32.mrb[14].mxu0 }
 0x2b9   : > { %v1205_v5 = vadd.f32 %v1199_v2, %v1090_v1  ;;  %v1202_v7 = vadd.f32 %v1448_v63, %v1201_v4  ;;  %v1614_v8 = vpop.f32.mrb[15].mxu0 }
 0x2bb   : > { %v1206_v9 = vadd.f32 %v1202_v7, %v1091_v6  ;;  %v1207_v10 = vmax.f32 %v1205_v5, 0.0 }
 0x2bd   : > { %v1208_v11 = vmax.f32 %v1206_v9, 0.0 }
 0x2bf   : > { %v1472_v12 = vpack.c.bf16 %v1208_v11, %v1207_v10 }
 0x2c1   : > { %1473 = vst [vmem:[%s428_s25] sm:$0xff] %v1472_v12  }
 0x2c2   : > { %1935 = shalt.err (!%p1932_p7)
}
 0x2c3   : > { %s1936_s11 = scalar_lea.hbm %s2411_s27, 128  ;;  %s1940_s17 = scalar_lea.hbm %s2508_s7, 256 }
 0x2c4   : > { %p1937_p12 = scmp.ne.s32.totalorder %s2411_s27, %s1936_s11  ;;  %p1941_p9 = scmp.lt.u32.totalorder %s2411_s27, %s2508_s7 }
 0x2c5   : > { %p1942_p0 = scmp.lt.u32.totalorder %s1940_s17, %s1936_s11  ;;  %p1944_p4 = scmp.lt.u32.totalorder %s1936_s11, %s2411_s27 }
 0x2c6   : > { %p1938_p6 = pnand %p1937_p12, %p2232_p10 }
 0x2c7   : > { %p1943_p2 = por %p1942_p0, %p1941_p9 }
 0x2c8   : > { %p1939_p11 = pneg %p1938_p6 }
 0x2c9   : > { %p1945_p8 = por %p1944_p4, %p1943_p2 }
 0x2cb   : > { %p1946_p1 = pnand %p1945_p8, %p1939_p11 }
 0x2cd   : > { %1949 = shalt.err (!%p1946_p1)
}
 0x2ce   : > { %s2029_s4 = smov 64   ;;  %s2030_s22 = smov 4  }
 0x2cf   : > { %1631 = dma.vmem_to_hbm [thread:$0]  (%p2232_p10), %s2413_s23, 128, %s2411_s27, %s1220_s15, %s2029_s4, %s2029_s4, %s2030_s22  }
 0x2d0 PF: > { %s2509_s25 = sld [smem:[#allocation17_spill]]  ;;  %s2510_s20 = sld [smem:[#allocation18_spill]] }
 0x2d1   : > { %p2512_p3 = scmp.ge.s32.totalorder %s2016_s10, 2 }
 0x2d6   : > { %s1250_s0 = sand.u32 1, %s2509_s25   ;;  %p2511_p13 = scmp.ne.s32.totalorder %s2510_s20, 0 }
 0x2d7   : > { %s1251_s24 = scalar_lea.sflag [#allocation4], %s1250_s0 }
 0x2d8   : > { %p1651_p5 = pnand %p2512_p3, %p2511_p13 }
 0x2da   : > { %1991 = dma.done.wait (!%p1651_p5), %s1251_s24, 128  }
 0x2db   : > { %1993 = vsyncadd (!%p1651_p5), %s1251_s24, 4294967168  ;;  %s28_s10 = sadd.s32 1, %s2016_s10   ;;  %s2513_s27 = smov %s2000_s28 }
 0x2dc   : > { %p25_p7 = scmp.ge.s32.totalorder %s28_s10, 4   ;;  %s2514_s28 = smov %s2004_s29 }
 0x2dd   : > { %s2515_s29 = smov %s2244_s12  ;;  %s2516_s30 = smov %s2012_s9 }
 0x2de   : > { %s2517_s9 = smov %s2519_s18  ;;  %27 = sbr.rel (!%p25_p7) target bundleno = 15 (0xf), region = 130 }
 0x2e5   :  { %1256 = vsyncpa [#allocation3], 1 }
 0x2e6   :  { %1258 = vsyncpa [#allocation3 + $0x1], 1 }
 0x2e7   :  { %1259 = vsyncpa [#allocation6], 1 }
 0x2e8   :  { %1261 = vsyncpa [#allocation6 + $0x1], 1 }
 0x2e9   :  { %1262 = vsyncpa [#allocation9], 1 }
 0x2ea   :  { %1263 = vsyncpa [#allocation4], 1 }
 0x2eb   :  { %1265 = vsyncpa [#allocation4 + $0x1], 1 }

</bundles_post_ra>
